<compile_context>
chip_gen: v7x
topology: tpu7x:2x2x1
jax: 0.10.0
libtpu: 0.0.40
codegen_flags: <defaults>
</compile_context>

<pallas_src>
import functools

import jax
import jax.numpy as jnp
from jax.experimental import pallas as pl
from jax.experimental.pallas import tpu as pltpu


# ----------------------------- Pallas kernel --------------------------------

def _qnet_fused_kernel(patchesT_ref, wmT_ref, cb_ref, data_ref,
                       w1a_ref, w1b_ref, b1_ref, w2_ref, b2_ref,
                       out_ref, ybt_scr, x1_scr):
    """conv(+ReLU) -> flatten -> [x1 | data] @ W1 -> ReLU -> @ W2, fused."""
    c_out = wmT_ref.shape[0]
    bm = patchesT_ref.shape[1]                  # B * OH*OW
    b_pad, x1_dim = x1_scr.shape
    m_sp = x1_dim // c_out                      # OH*OW
    b_real = bm // m_sp                         # real batch

    # cnn_net: Conv2d(C_IN, C_OUT, 3, stride=2, padding=1) + ReLU, computed
    # transposed and batched as ONE MXU dot so the activation is lane dense:
    #   ybT[c, b*M + m] = conv_out(b, m, c).   bf16 operands, f32 accumulate.
    ybT = jnp.dot(wmT_ref[...], patchesT_ref[...],
                  preferred_element_type=jnp.float32)           # (C_OUT, B*M)
    ybt_scr[...] = jnp.maximum(ybT + cb_ref[...], 0.0)          # 1 full store

    # x1 = torch NCHW flatten: row b, lane c*M + m.  Realized as B*C_OUT = 16
    # static (1, M) ref-to-ref copies (vs. 128 masked (1,8) stores before).
    # Padded batch rows stay zero (sliced off in the wrapper anyway).
    x1_scr[...] = jnp.zeros_like(x1_scr)
    for b in range(b_real):
        for c in range(c_out):
            x1_scr[b:b + 1, c * m_sp:(c + 1) * m_sp] = (
                ybt_scr[c:c + 1, b * m_sp:(b + 1) * m_sp])

    # QNet head: Linear(num_inputs, 64) -> ReLU -> Linear(64, num_outputs).
    # The concat((x1, data)) is a split-K pair of dots (x1_dim + d_data).
    h = jnp.dot(x1_scr[...].astype(jnp.bfloat16), w1a_ref[...],
                preferred_element_type=jnp.float32)             # (B_pad, HID_PAD)
    h = h + jnp.dot(data_ref[...], w1b_ref[...],
                    preferred_element_type=jnp.float32)
    h = jnp.maximum(h + b1_ref[...], 0.0)
    out = jnp.dot(h.astype(jnp.bfloat16), w2_ref[...],
                  preferred_element_type=jnp.float32)
    out_ref[...] = out + b2_ref[...]                            # (B_pad, NOUT_PAD)


def _vmem():
    return pl.BlockSpec(memory_space=pltpu.MemorySpace.VMEM)


# ------------------------------- JAX glue ------------------------------------

def _im2col_nhwc(x_nhwc, kh, kw, stride, pad):
    """(B,H,W,C) -> ((B, OH*OW, kh*kw*C), OH, OW); K order = (ki, kj, c)."""
    B, H, W, C = x_nhwc.shape
    xp = jnp.pad(x_nhwc, ((0, 0), (pad, pad), (pad, pad), (0, 0)))
    OH = (H + 2 * pad - kh) // stride + 1
    OW = (W + 2 * pad - kw) // stride + 1
    cols = []
    for i in range(kh):
        for j in range(kw):
            cols.append(xp[:, i:i + stride * OH:stride,
                           j:j + stride * OW:stride, :])        # (B, OH, OW, C)
    cols = jnp.stack(cols, axis=3)                              # (B,OH,OW,kh*kw,C)
    return cols.reshape(B, OH * OW, kh * kw * C), OH, OW


def init_torch_params(key, c_in, c_out, d_data, h, w, num_outputs):
    """Synthetic params in the PyTorch module's native layout."""
    kh = kw = 3
    stride, pad = 2, 1
    oh = (h + 2 * pad - kh) // stride + 1
    ow = (w + 2 * pad - kw) // stride + 1
    num_inputs = c_out * oh * ow + d_data       # x1.reshape(B,-1) ++ data

    ks = jax.random.split(key, 6)
    tparams = {
        "conv_w": 0.1 * jax.random.normal(ks[0], (c_out, c_in, kh, kw), jnp.float32),
        "conv_b": 0.1 * jax.random.normal(ks[1], (c_out,), jnp.float32),
        "w1": 0.05 * jax.random.normal(ks[2], (64, num_inputs), jnp.float32),   # (out,in)
        "b1": 0.05 * jax.random.normal(ks[3], (64,), jnp.float32),
        "w2": 0.05 * jax.random.normal(ks[4], (num_outputs, 64), jnp.float32),  # (out,in)
        "b2": 0.05 * jax.random.normal(ks[5], (num_outputs,), jnp.float32),
    }
    meta = dict(kh=kh, kw=kw, stride=stride, pad=pad, oh=oh, ow=ow,
                c_out=c_out, d_data=d_data, num_outputs=num_outputs,
                hid=64, hid_pad=128, nout_pad=128,
                k_raw=kh * kw * c_in, k_pad=48, b_pad=8)
    return tparams, meta


def preprocess_params(tparams, meta):
    """One-time layout folding: transposed NHWC-im2col conv weight (K padded to
    48), torch-native W1 split at the concat boundary (no row permutation),
    bf16 casts of the large operands, and (8,128)-friendly zero padding."""
    oh, ow, c_out = meta["oh"], meta["ow"], meta["c_out"]
    hid, hid_pad = meta["hid"], meta["hid_pad"]
    n_out, nout_pad = meta["num_outputs"], meta["nout_pad"]
    k_raw, k_pad = meta["k_raw"], meta["k_pad"]
    x1_dim = c_out * oh * ow

    # Conv2d weight (Cout, Cin, KH, KW) -> (Cout, KH*KW*Cin), K-order
    # (ki, kj, c_in) matching the NHWC im2col, zero-padded to K_pad columns.
    wmT = jnp.transpose(tparams["conv_w"], (0, 2, 3, 1)).reshape(c_out, k_raw)
    wmT = jnp.pad(wmT, ((0, 0), (0, k_pad - k_raw))).astype(jnp.bfloat16)
    cb = tparams["conv_b"].reshape(c_out, 1).astype(jnp.float32)

    # Linear(num_inputs, 64): torch weight (64, num_inputs) -> (num_inputs, 64);
    # split into the x1 part (torch NCHW-flatten row order, kept as-is) and the
    # data part; hidden dim zero-padded 64 -> 128.
    w1_in = tparams["w1"].T                                   # (num_inputs, 64)
    pad_h = hid_pad - hid
    w1a = jnp.pad(w1_in[:x1_dim], ((0, 0), (0, pad_h))).astype(jnp.bfloat16)
    w1b = jnp.pad(w1_in[x1_dim:], ((0, 0), (0, pad_h))).astype(jnp.bfloat16)
    b1 = jnp.pad(tparams["b1"], (0, pad_h)).reshape(1, hid_pad).astype(jnp.float32)

    # Linear(64, num_outputs) -> (128, 128) zero-padded (lane-dense output).
    w2 = jnp.pad(tparams["w2"].T,
                 ((0, pad_h), (0, nout_pad - n_out))).astype(jnp.bfloat16)
    b2 = jnp.pad(tparams["b2"],
                 (0, nout_pad - n_out)).reshape(1, nout_pad).astype(jnp.float32)

    return {"wmT": wmT, "cb": cb, "w1a": w1a, "w1b": w1b, "b1": b1,
            "w2": w2, "b2": b2}


def qnet_forward_pallas(image_nhwc, data, prep, meta):
    """Forward pass equivalent to QNet.forward(image, data, cnn_net)."""
    B = image_nhwc.shape[0]
    m_sp = meta["oh"] * meta["ow"]
    c_out, k_raw, k_pad = meta["c_out"], meta["k_raw"], meta["k_pad"]
    b_pad, hid_pad, nout_pad = meta["b_pad"], meta["hid_pad"], meta["nout_pad"]
    x1_dim = c_out * m_sp

    # im2col in NHWC, zero-pad K 36->48, transpose to (K_pad, B*M), cast bf16.
    patches, _, _ = _im2col_nhwc(image_nhwc, meta["kh"], meta["kw"],
                                 meta["stride"], meta["pad"])
    patches = jnp.pad(patches, ((0, 0), (0, 0), (0, k_pad - k_raw)))
    patchesT = jnp.transpose(patches, (2, 0, 1)).reshape(k_pad, B * m_sp)
    patchesT = patchesT.astype(jnp.bfloat16)

    # Pad batch rows to 8 so head dots / output store are full-sublane.
    data_p = jnp.pad(data, ((0, b_pad - B), (0, 0))).astype(jnp.bfloat16)

    operands = (patchesT, prep["wmT"], prep["cb"], data_p,
                prep["w1a"], prep["w1b"], prep["b1"], prep["w2"], prep["b2"])

    flops = 2 * (c_out * k_pad * B * m_sp
                 + b_pad * x1_dim * hid_pad
                 + b_pad * data_p.shape[1] * hid_pad
                 + b_pad * hid_pad * nout_pad)
    bytes_accessed = int(sum(int(o.size) * o.dtype.itemsize for o in operands)
                         + b_pad * nout_pad * 4)

    out_pad = pl.pallas_call(
        _qnet_fused_kernel,
        out_shape=jax.ShapeDtypeStruct((b_pad, nout_pad), jnp.float32),
        in_specs=[_vmem()] * len(operands),
        out_specs=_vmem(),
        scratch_shapes=[pltpu.VMEM((c_out, B * m_sp), jnp.float32),   # ybT
                        pltpu.VMEM((b_pad, x1_dim), jnp.float32)],    # x1 flat
        cost_estimate=pl.CostEstimate(flops=int(flops), transcendentals=0,
                                      bytes_accessed=bytes_accessed),
    )(*operands)
    return out_pad[:B, :meta["num_outputs"]]


def qnet_reference(image_nhwc, data, tparams):
    """Pure-JAX (f32) replica of the PyTorch forward (layout-faithful)."""
    x = jnp.transpose(image_nhwc, (0, 3, 1, 2))                 # NHWC -> NCHW
    y = jax.lax.conv_general_dilated(
        x, tparams["conv_w"], window_strides=(2, 2), padding=((1, 1), (1, 1)),
        dimension_numbers=("NCHW", "OIHW", "NCHW"))
    y = jnp.maximum(y + tparams["conv_b"][None, :, None, None], 0.0)
    x1 = y.reshape(y.shape[0], -1)                              # NCHW flatten
    xcat = jnp.concatenate([x1, data], axis=1)
    h = jnp.maximum(xcat @ tparams["w1"].T + tparams["b1"], 0.0)
    return h @ tparams["w2"].T + tparams["b2"]


# --------------------------------- main ---------------------------------------

if __name__ == "__main__":
    B, H, W, C_IN = 2, 16, 16, 4        # image is NHWC at the QNet call site
    C_OUT = 8                           # cnn_net output channels
    D_DATA = 8                          # extra "data" features
    NUM_OUTPUTS = 6                     # num_actions

    key = jax.random.PRNGKey(0)
    k_img, k_data, k_par = jax.random.split(key, 3)
    image = jax.random.normal(k_img, (B, H, W, C_IN), jnp.float32)
    data = jax.random.normal(k_data, (B, D_DATA), jnp.float32)

    tparams, meta = init_torch_params(k_par, C_IN, C_OUT, D_DATA, H, W, NUM_OUTPUTS)
    prep = preprocess_params(tparams, meta)     # one-time layout folding + bf16

    fwd = jax.jit(functools.partial(qnet_forward_pallas, prep=prep, meta=meta))
    out = jax.block_until_ready(fwd(image, data))
    assert out.shape == (B, NUM_OUTPUTS)

    ref = jax.block_until_ready(jax.jit(qnet_reference)(image, data, tparams))
    # Tolerance sized for bf16 dot operands with f32 accumulation (expected
    # abs error ~1e-3 at these magnitudes); layout/permutation bugs would
    # produce O(0.1-1) errors and still be caught.
    assert bool(jnp.allclose(out, ref, atol=2e-2, rtol=2e-2)), "mismatch vs reference"
    print("KERNEL_OK")
</pallas_src>

<mosaic_0001>
module attributes {stable_mosaic.version = 11 : i64} {
  func.func @_qnet_fused_kernel(%arg0: memref<48x128xbf16, #tpu.memory_space<vmem>>, %arg1: memref<8x48xbf16, #tpu.memory_space<vmem>>, %arg2: memref<8x1xf32, #tpu.memory_space<vmem>>, %arg3: memref<8x8xbf16, #tpu.memory_space<vmem>>, %arg4: memref<512x128xbf16, #tpu.memory_space<vmem>>, %arg5: memref<8x128xbf16, #tpu.memory_space<vmem>>, %arg6: memref<1x128xf32, #tpu.memory_space<vmem>>, %arg7: memref<128x128xbf16, #tpu.memory_space<vmem>>, %arg8: memref<1x128xf32, #tpu.memory_space<vmem>>, %arg9: memref<8x128xf32, #tpu.memory_space<vmem>>, %arg10: memref<8x128xf32, #tpu.memory_space<vmem>>, %arg11: memref<8x512xf32, #tpu.memory_space<vmem>>) attributes {dimension_semantics = [], scalar_prefetch = 0 : i64, scratch_operands = 2 : i64, tpu.core_type = #tpu.core_type<tc>} {
    %c0 = arith.constant 0 : index
    %c0_0 = arith.constant 0 : index
    %0 = vector.load %arg1[%c0, %c0_0] : memref<8x48xbf16, #tpu.memory_space<vmem>>, vector<8x48xbf16>
    %c0_1 = arith.constant 0 : index
    %c0_2 = arith.constant 0 : index
    %1 = vector.load %arg0[%c0_1, %c0_2] : memref<48x128xbf16, #tpu.memory_space<vmem>>, vector<48x128xbf16>
    %cst = arith.constant dense<0.000000e+00> : vector<8x128xf32>
    %2 = tpu.matmul %0, %1, %cst {dimension_numbers = #tpu.dot_dimension_numbers<[1], [0], [0], [1], [0, 0, 1, 1], [], []>} : vector<8x48xbf16>, vector<48x128xbf16>, vector<8x128xf32> -> vector<8x128xf32>
    %c0_3 = arith.constant 0 : index
    %c0_4 = arith.constant 0 : index
    %3 = vector.load %arg2[%c0_3, %c0_4] : memref<8x1xf32, #tpu.memory_space<vmem>>, vector<8x1xf32>
    %4 = vector.broadcast %3 : vector<8x1xf32> to vector<8x128xf32>
    %5 = arith.addf %2, %4 : vector<8x128xf32>
    %cst_5 = arith.constant 0.000000e+00 : f32
    %6 = vector.broadcast %cst_5 : f32 to vector<8x128xf32>
    %7 = arith.maximumf %5, %6 : vector<8x128xf32>
    %c0_6 = arith.constant 0 : index
    %c0_7 = arith.constant 0 : index
    %8 = vector.load %arg10[%c0_6, %c0_7] : memref<8x128xf32, #tpu.memory_space<vmem>>, vector<8x128xf32>
    tpu.vector_store %arg10[%c0_6, %c0_7], %7 {strides = array<i32>} : memref<8x128xf32, #tpu.memory_space<vmem>>, vector<8x128xf32>,
    %cst_8 = arith.constant 0.000000e+00 : f32
    %9 = vector.broadcast %cst_8 : f32 to vector<8x512xf32>
    %c0_9 = arith.constant 0 : index
    %c0_10 = arith.constant 0 : index
    %10 = vector.load %arg11[%c0_9, %c0_10] : memref<8x512xf32, #tpu.memory_space<vmem>>, vector<8x512xf32>
    tpu.vector_store %arg11[%c0_9, %c0_10], %9 {strides = array<i32>} : memref<8x512xf32, #tpu.memory_space<vmem>>, vector<8x512xf32>,
    %c0_11 = arith.constant 0 : index
    %c0_12 = arith.constant 0 : index
    %11 = vector.load %arg10[%c0_11, %c0_12] : memref<8x128xf32, #tpu.memory_space<vmem>>, vector<1x64xf32>
    %c0_13 = arith.constant 0 : index
    %c0_14 = arith.constant 0 : index
    %12 = vector.load %arg11[%c0_13, %c0_14] : memref<8x512xf32, #tpu.memory_space<vmem>>, vector<1x64xf32>
    tpu.vector_store %arg11[%c0_13, %c0_14], %11 {strides = array<i32>} : memref<8x512xf32, #tpu.memory_space<vmem>>, vector<1x64xf32>,
    %c1 = arith.constant 1 : index
    %c0_15 = arith.constant 0 : index
    %13 = vector.load %arg10[%c1, %c0_15] : memref<8x128xf32, #tpu.memory_space<vmem>>, vector<1x64xf32>
    %c0_16 = arith.constant 0 : index
    %c64 = arith.constant 64 : index
    %14 = vector.load %arg11[%c0_16, %c64] : memref<8x512xf32, #tpu.memory_space<vmem>>, vector<1x64xf32>
    tpu.vector_store %arg11[%c0_16, %c64], %13 {strides = array<i32>} : memref<8x512xf32, #tpu.memory_space<vmem>>, vector<1x64xf32>,
    %c2 = arith.constant 2 : index
    %c0_17 = arith.constant 0 : index
    %15 = vector.load %arg10[%c2, %c0_17] : memref<8x128xf32, #tpu.memory_space<vmem>>, vector<1x64xf32>
    %c0_18 = arith.constant 0 : index
    %c128 = arith.constant 128 : index
    %16 = vector.load %arg11[%c0_18, %c128] : memref<8x512xf32, #tpu.memory_space<vmem>>, vector<1x64xf32>
    tpu.vector_store %arg11[%c0_18, %c128], %15 {strides = array<i32>} : memref<8x512xf32, #tpu.memory_space<vmem>>, vector<1x64xf32>,
    %c3 = arith.constant 3 : index
    %c0_19 = arith.constant 0 : index
    %17 = vector.load %arg10[%c3, %c0_19] : memref<8x128xf32, #tpu.memory_space<vmem>>, vector<1x64xf32>
    %c0_20 = arith.constant 0 : index
    %c192 = arith.constant 192 : index
    %18 = vector.load %arg11[%c0_20, %c192] : memref<8x512xf32, #tpu.memory_space<vmem>>, vector<1x64xf32>
    tpu.vector_store %arg11[%c0_20, %c192], %17 {strides = array<i32>} : memref<8x512xf32, #tpu.memory_space<vmem>>, vector<1x64xf32>,
    %c4 = arith.constant 4 : index
    %c0_21 = arith.constant 0 : index
    %19 = vector.load %arg10[%c4, %c0_21] : memref<8x128xf32, #tpu.memory_space<vmem>>, vector<1x64xf32>
    %c0_22 = arith.constant 0 : index
    %c256 = arith.constant 256 : index
    %20 = vector.load %arg11[%c0_22, %c256] : memref<8x512xf32, #tpu.memory_space<vmem>>, vector<1x64xf32>
    tpu.vector_store %arg11[%c0_22, %c256], %19 {strides = array<i32>} : memref<8x512xf32, #tpu.memory_space<vmem>>, vector<1x64xf32>,
    %c5 = arith.constant 5 : index
    %c0_23 = arith.constant 0 : index
    %21 = vector.load %arg10[%c5, %c0_23] : memref<8x128xf32, #tpu.memory_space<vmem>>, vector<1x64xf32>
    %c0_24 = arith.constant 0 : index
    %c320 = arith.constant 320 : index
    %22 = vector.load %arg11[%c0_24, %c320] : memref<8x512xf32, #tpu.memory_space<vmem>>, vector<1x64xf32>
    tpu.vector_store %arg11[%c0_24, %c320], %21 {strides = array<i32>} : memref<8x512xf32, #tpu.memory_space<vmem>>, vector<1x64xf32>,
    %c6 = arith.constant 6 : index
    %c0_25 = arith.constant 0 : index
    %23 = vector.load %arg10[%c6, %c0_25] : memref<8x128xf32, #tpu.memory_space<vmem>>, vector<1x64xf32>
    %c0_26 = arith.constant 0 : index
    %c384 = arith.constant 384 : index
    %24 = vector.load %arg11[%c0_26, %c384] : memref<8x512xf32, #tpu.memory_space<vmem>>, vector<1x64xf32>
    tpu.vector_store %arg11[%c0_26, %c384], %23 {strides = array<i32>} : memref<8x512xf32, #tpu.memory_space<vmem>>, vector<1x64xf32>,
    %c7 = arith.constant 7 : index
    %c0_27 = arith.constant 0 : index
    %25 = vector.load %arg10[%c7, %c0_27] : memref<8x128xf32, #tpu.memory_space<vmem>>, vector<1x64xf32>
    %c0_28 = arith.constant 0 : index
    %c448 = arith.constant 448 : index
    %26 = vector.load %arg11[%c0_28, %c448] : memref<8x512xf32, #tpu.memory_space<vmem>>, vector<1x64xf32>
    tpu.vector_store %arg11[%c0_28, %c448], %25 {strides = array<i32>} : memref<8x512xf32, #tpu.memory_space<vmem>>, vector<1x64xf32>,
    %c0_29 = arith.constant 0 : index
    %c64_30 = arith.constant 64 : index
    %27 = vector.load %arg10[%c0_29, %c64_30] : memref<8x128xf32, #tpu.memory_space<vmem>>, vector<1x64xf32>
    %c1_31 = arith.constant 1 : index
    %c0_32 = arith.constant 0 : index
    %28 = vector.load %arg11[%c1_31, %c0_32] : memref<8x512xf32, #tpu.memory_space<vmem>>, vector<1x64xf32>
    tpu.vector_store %arg11[%c1_31, %c0_32], %27 {strides = array<i32>} : memref<8x512xf32, #tpu.memory_space<vmem>>, vector<1x64xf32>,
    %c1_33 = arith.constant 1 : index
    %c64_34 = arith.constant 64 : index
    %29 = vector.load %arg10[%c1_33, %c64_34] : memref<8x128xf32, #tpu.memory_space<vmem>>, vector<1x64xf32>
    %c1_35 = arith.constant 1 : index
    %c64_36 = arith.constant 64 : index
    %30 = vector.load %arg11[%c1_35, %c64_36] : memref<8x512xf32, #tpu.memory_space<vmem>>, vector<1x64xf32>
    tpu.vector_store %arg11[%c1_35, %c64_36], %29 {strides = array<i32>} : memref<8x512xf32, #tpu.memory_space<vmem>>, vector<1x64xf32>,
    %c2_37 = arith.constant 2 : index
    %c64_38 = arith.constant 64 : index
    %31 = vector.load %arg10[%c2_37, %c64_38] : memref<8x128xf32, #tpu.memory_space<vmem>>, vector<1x64xf32>
    %c1_39 = arith.constant 1 : index
    %c128_40 = arith.constant 128 : index
    %32 = vector.load %arg11[%c1_39, %c128_40] : memref<8x512xf32, #tpu.memory_space<vmem>>, vector<1x64xf32>
    tpu.vector_store %arg11[%c1_39, %c128_40], %31 {strides = array<i32>} : memref<8x512xf32, #tpu.memory_space<vmem>>, vector<1x64xf32>,
    %c3_41 = arith.constant 3 : index
    %c64_42 = arith.constant 64 : index
    %33 = vector.load %arg10[%c3_41, %c64_42] : memref<8x128xf32, #tpu.memory_space<vmem>>, vector<1x64xf32>
    %c1_43 = arith.constant 1 : index
    %c192_44 = arith.constant 192 : index
    %34 = vector.load %arg11[%c1_43, %c192_44] : memref<8x512xf32, #tpu.memory_space<vmem>>, vector<1x64xf32>
    tpu.vector_store %arg11[%c1_43, %c192_44], %33 {strides = array<i32>} : memref<8x512xf32, #tpu.memory_space<vmem>>, vector<1x64xf32>,
    %c4_45 = arith.constant 4 : index
    %c64_46 = arith.constant 64 : index
    %35 = vector.load %arg10[%c4_45, %c64_46] : memref<8x128xf32, #tpu.memory_space<vmem>>, vector<1x64xf32>
    %c1_47 = arith.constant 1 : index
    %c256_48 = arith.constant 256 : index
    %36 = vector.load %arg11[%c1_47, %c256_48] : memref<8x512xf32, #tpu.memory_space<vmem>>, vector<1x64xf32>
    tpu.vector_store %arg11[%c1_47, %c256_48], %35 {strides = array<i32>} : memref<8x512xf32, #tpu.memory_space<vmem>>, vector<1x64xf32>,
    %c5_49 = arith.constant 5 : index
    %c64_50 = arith.constant 64 : index
    %37 = vector.load %arg10[%c5_49, %c64_50] : memref<8x128xf32, #tpu.memory_space<vmem>>, vector<1x64xf32>
    %c1_51 = arith.constant 1 : index
    %c320_52 = arith.constant 320 : index
    %38 = vector.load %arg11[%c1_51, %c320_52] : memref<8x512xf32, #tpu.memory_space<vmem>>, vector<1x64xf32>
    tpu.vector_store %arg11[%c1_51, %c320_52], %37 {strides = array<i32>} : memref<8x512xf32, #tpu.memory_space<vmem>>, vector<1x64xf32>,
    %c6_53 = arith.constant 6 : index
    %c64_54 = arith.constant 64 : index
    %39 = vector.load %arg10[%c6_53, %c64_54] : memref<8x128xf32, #tpu.memory_space<vmem>>, vector<1x64xf32>
    %c1_55 = arith.constant 1 : index
    %c384_56 = arith.constant 384 : index
    %40 = vector.load %arg11[%c1_55, %c384_56] : memref<8x512xf32, #tpu.memory_space<vmem>>, vector<1x64xf32>
    tpu.vector_store %arg11[%c1_55, %c384_56], %39 {strides = array<i32>} : memref<8x512xf32, #tpu.memory_space<vmem>>, vector<1x64xf32>,
    %c7_57 = arith.constant 7 : index
    %c64_58 = arith.constant 64 : index
    %41 = vector.load %arg10[%c7_57, %c64_58] : memref<8x128xf32, #tpu.memory_space<vmem>>, vector<1x64xf32>
    %c1_59 = arith.constant 1 : index
    %c448_60 = arith.constant 448 : index
    %42 = vector.load %arg11[%c1_59, %c448_60] : memref<8x512xf32, #tpu.memory_space<vmem>>, vector<1x64xf32>
    tpu.vector_store %arg11[%c1_59, %c448_60], %41 {strides = array<i32>} : memref<8x512xf32, #tpu.memory_space<vmem>>, vector<1x64xf32>,
    %c0_61 = arith.constant 0 : index
    %c0_62 = arith.constant 0 : index
    %43 = vector.load %arg11[%c0_61, %c0_62] : memref<8x512xf32, #tpu.memory_space<vmem>>, vector<8x512xf32>
    %44 = arith.truncf %43 : vector<8x512xf32> to vector<8x512xbf16>
    %c0_63 = arith.constant 0 : index
    %c0_64 = arith.constant 0 : index
    %45 = vector.load %arg4[%c0_63, %c0_64] : memref<512x128xbf16, #tpu.memory_space<vmem>>, vector<512x128xbf16>
    %cst_65 = arith.constant dense<0.000000e+00> : vector<8x128xf32>
    %46 = tpu.matmul %44, %45, %cst_65 {dimension_numbers = #tpu.dot_dimension_numbers<[1], [0], [0], [1], [0, 0, 1, 1], [], []>} : vector<8x512xbf16>, vector<512x128xbf16>, vector<8x128xf32> -> vector<8x128xf32>
    %c0_66 = arith.constant 0 : index
    %c0_67 = arith.constant 0 : index
    %47 = vector.load %arg3[%c0_66, %c0_67] : memref<8x8xbf16, #tpu.memory_space<vmem>>, vector<8x8xbf16>
    %c0_68 = arith.constant 0 : index
    %c0_69 = arith.constant 0 : index
    %48 = vector.load %arg5[%c0_68, %c0_69] : memref<8x128xbf16, #tpu.memory_space<vmem>>, vector<8x128xbf16>
    %cst_70 = arith.constant dense<0.000000e+00> : vector<8x128xf32>
    %49 = tpu.matmul %47, %48, %cst_70 {dimension_numbers = #tpu.dot_dimension_numbers<[1], [0], [0], [1], [0, 0, 1, 1], [], []>} : vector<8x8xbf16>, vector<8x128xbf16>, vector<8x128xf32> -> vector<8x128xf32>
    %50 = arith.addf %46, %49 : vector<8x128xf32>
    %c0_71 = arith.constant 0 : index
    %c0_72 = arith.constant 0 : index
    %51 = vector.load %arg6[%c0_71, %c0_72] : memref<1x128xf32, #tpu.memory_space<vmem>>, vector<1x128xf32>
    %52 = vector.broadcast %51 : vector<1x128xf32> to vector<8x128xf32>
    %53 = arith.addf %50, %52 : vector<8x128xf32>
    %cst_73 = arith.constant 0.000000e+00 : f32
    %54 = vector.broadcast %cst_73 : f32 to vector<8x128xf32>
    %55 = arith.maximumf %53, %54 : vector<8x128xf32>
    %56 = arith.truncf %55 : vector<8x128xf32> to vector<8x128xbf16>
    %c0_74 = arith.constant 0 : index
    %c0_75 = arith.constant 0 : index
    %57 = vector.load %arg7[%c0_74, %c0_75] : memref<128x128xbf16, #tpu.memory_space<vmem>>, vector<128x128xbf16>
    %cst_76 = arith.constant dense<0.000000e+00> : vector<8x128xf32>
    %58 = tpu.matmul %56, %57, %cst_76 {dimension_numbers = #tpu.dot_dimension_numbers<[1], [0], [0], [1], [0, 0, 1, 1], [], []>} : vector<8x128xbf16>, vector<128x128xbf16>, vector<8x128xf32> -> vector<8x128xf32>
    %c0_77 = arith.constant 0 : index
    %c0_78 = arith.constant 0 : index
    %59 = vector.load %arg8[%c0_77, %c0_78] : memref<1x128xf32, #tpu.memory_space<vmem>>, vector<1x128xf32>
    %60 = vector.broadcast %59 : vector<1x128xf32> to vector<8x128xf32>
    %61 = arith.addf %58, %60 : vector<8x128xf32>
    %c0_79 = arith.constant 0 : index
    %c0_80 = arith.constant 0 : index
    %62 = vector.load %arg9[%c0_79, %c0_80] : memref<8x128xf32, #tpu.memory_space<vmem>>, vector<8x128xf32>
    tpu.vector_store %arg9[%c0_79, %c0_80], %61 {strides = array<i32>} : memref<8x128xf32, #tpu.memory_space<vmem>>, vector<8x128xf32>,
    return
  }
}

</mosaic_0001>

<bundles_post_ra>
// kernel: qnet_forward_pallas.1
= control target key start
LH: loop header
LB: loop body
LE: loop exit
PB: predicated region body
PF: predicated region fallthrough
CT: control target
= control target key end

     0   :  { %v890_v0 = vmov 0.0   ;;  %vm891_vm0 = vmmov 0   ;;  %v892_v2 = vmov 0   ;;  %vm64_vm1 = vcmask 392192   ;;  %s893_s21 = smov 64   ;;  %s1143_s0 = inlined_call_operand.vmem [shape: bf16[48,128], index: 0, kind: input, shape index: {}]   ;;  %s1144_s2 = inlined_call_operand.vmem [shape: f32[8,1], index: 2, kind: input, shape index: {}]   ;;  %s1145_s1 = inlined_call_operand.vmem [shape: bf16[8,48], index: 1, kind: input, shape index: {}]   ;;  %s1146_s4 = inlined_call_operand.vmem [shape: bf16[512,128], index: 4, kind: input, shape index: {}]   ;;  %s1147_s5 = inlined_call_operand.vmem [shape: bf16[8,128], index: 5, kind: input, shape index: {}]   ;;  %s1148_s3 = inlined_call_operand.vmem [shape: bf16[8,8], index: 3, kind: input, shape index: {}]   ;;  %s1149_s7 = inlined_call_operand.vmem [shape: bf16[128,128], index: 7, kind: input, shape index: {}]   ;;  %s1150_s6 = inlined_call_operand.vmem [shape: f32[1,128], index: 6, kind: input, shape index: {}]   ;;  %s1151_s8 = inlined_call_operand.vmem [shape: f32[1,128], index: 8, kind: input, shape index: {}]   ;;  %s1152_s9 = inlined_call_operand.vmem [shape: f32[8,128], index: 9, kind: output, shape index: {}]  }
   0x1   :  { %806 = vmatprep.subr.bf16.mxu0 %v890_v0  ;;  %110 = vst [vmem:[#allocation3] sm:$0xff] %v890_v0  ;;  %111 = vst [vmem:[#allocation3 + $0x8] sm:$0xff] %v890_v0  ;;  %v847_v1 = vld [vmem:[%s1143_s0] sm:$0xff]   ;;  %812 = vmatprep.mubr.msk.bf16.mxu0 %vm891_vm0, %v890_v0  ;;  %v848_v3 = vld [vmem:[%s1143_s0 + $0x8] sm:$0xff]   ;;  %vm258_vm2 = vcmask 1043456   ;;  %vm254_vm3 = vcmask 64512  }
   0x2   :  { %112 = vst [vmem:[#allocation3 + $0x10] sm:$0xff] %v890_v0  ;;  %113 = vst [vmem:[#allocation3 + $0x18] sm:$0xff] %v890_v0  ;;  %846 = vset.pattern.permute.xlu0 %v892_v2  ;;  %807 = vmatpush3.bf16.msra.mxu0 %v847_v1  ;;  %v40_v4 = vld [vmem:[%s1144_s2] sm:$0xff]  ;;  %v849_v5 = vld [vmem:[%s1143_s0 + $0x10] sm:$0xff]   ;;  %vm115_vm4 = vcmask 516096   ;;  %vm122_vm5 = vcmask 1040896  }
   0x3   :  { %808 = vmatprep.subr.bf16.mxu0 %v890_v0  ;;  %43 = vperm.xlu0 %846, %v40_v4   ;;  %v33_v6 = vld [vmem:[%s1145_s1] sm:$0xf]  ;;  %v852_v11 = vld [vmem:[%s1146_s4 + $0x48] sm:$0xff]   ;;  %v854_v14 = vld [vmem:[%s1146_s4 + $0x50] sm:$0xff]  }
   0x4   :  { %v850_v7 = vld [vmem:[%s1146_s4 + $0x40] sm:$0xff]   ;;  %v853_v12 = vld [vmem:[%s1146_s4 + $0x8] sm:$0xff]   ;;  %v856_v16 = vld [vmem:[%s1146_s4 + $0x10] sm:$0xff]  }
   0x5   :  { %v253_v8 = vld [vmem:[%s1147_s5] sm:$0xf]  ;;  %753 = vmatprep.subr.bf16.mxu1 %v850_v7  ;;  %v858_v18 = vld [vmem:[%s1146_s4 + $0x58] sm:$0xff]   ;;  %v859_v19 = vld [vmem:[%s1146_s4 + $0xc8] sm:$0xff]  }
   0x6   :  { %809 = vmatpush3.bf16.msra.mxu0 %v848_v3  ;;  %v260_v9 = vsel %vm258_vm2, %v253_v8, 0  ;;  %v851_v10 = vld [vmem:[%s1146_s4] sm:$0xff]   ;;  %v860_v20 = vld [vmem:[%s1146_s4 + $0x18] sm:$0xff]   ;;  %v861_v21 = vld [vmem:[%s1146_s4 + $0x88] sm:$0xff]  }
   0x7   :  { %810 = vmatprep.subr.bf16.mxu0 %v890_v0  ;;  %754 = vmatpush3.bf16.msra.mxu1 %v851_v10  ;;  %v252_v13 = vld [vmem:[%s1148_s3] sm:$0xf]  ;;  %v863_v23 = vld [vmem:[%s1146_s4 + $0xd0] sm:$0xff]   ;;  %v866_v30 = vld [vmem:[%s1146_s4 + $0x68] sm:$0xff]  }
   0x8   :  { %755 = vmatprep.subr.bf16.mxu1 %v852_v11  ;;  %v855_v15 = vld [vmem:[%s1146_s4 + $0xc0] sm:$0xff]   ;;  %v865_v29 = vld [vmem:[%s1146_s4 + $0x90] sm:$0xff]   ;;  %v867_v32 = vld [vmem:[%s1146_s4 + $0xd8] sm:$0xff]  }
   0x9   :  { %v857_v17 = vld [vmem:[%s1146_s4 + $0x80] sm:$0xff]   ;;  %v868_v35 = vld [vmem:[%s1146_s4 + $0x28] sm:$0xff]   ;;  %v869_v36 = vld [vmem:[%s1146_s4 + $0x98] sm:$0xff]  }
   0xa   :  { %811 = vmatpush3.bf16.msra.mxu0 %v849_v5  ;;  %v862_v22 = vld [vmem:[%s1146_s4 + $0x60] sm:$0xff]   ;;  %v870_v37 = vld [vmem:[%s1146_s4 + $0x70] sm:$0xff]   ;;  %v874_v41 = vld [vmem:[%s1146_s4 + $0x78] sm:$0xff]  }
   0xb   :  { %816 = vmatprep.subr.bf16.mxu0 %v890_v0  ;;  %756 = vmatpush3.bf16.msra.mxu1 %v853_v12  ;;  %v864_v28 = vld [vmem:[%s1146_s4 + $0x20] sm:$0xff]   ;;  %v872_v39 = vld [vmem:[%s1146_s4 + $0x30] sm:$0xff]   ;;  %v875_v42 = vld [vmem:[%s1146_s4 + $0xe8] sm:$0xff]  }
   0xc   :  { %757 = vmatprep.subr.bf16.mxu1 %v854_v14  ;;  %v871_v38 = vld [vmem:[%s1146_s4 + $0xe0] sm:$0xff]   ;;  %v876_v51 = vld [vmem:[%s1146_s4 + $0x38] sm:$0xff]   ;;  %v877_v52 = vld [vmem:[%s1146_s4 + $0xa8] sm:$0xff]  }
   0xd   :  { %813 = vmatmul.mubr.msk.bf16.vlgmr.msra.gmra.mrb[0].mxu0 %vm64_vm1, %v33_v6  ;;  %v873_v40 = vld [vmem:[%s1146_s4 + $0xa0] sm:$0xff]   ;;  %v878_v53 = vld [vmem:[%s1146_s4 + $0xf0] sm:$0xff]   ;;  %v880_v57 = vld [vmem:[%s1146_s4 + $0xf8] sm:$0xff]  }
   0xe   :  { %818 = vmatprep.mubr.msk.bf16.mxu0 %vm891_vm0, %v890_v0  ;;  %817 = vmatpush3.bf16.msra.mxu0 %v260_v9  ;;  %v879_v54 = vld [vmem:[%s1146_s4 + $0xb0] sm:$0xff]   ;;  %v881_v59 = vld [vmem:[%s1146_s4 + $0xb8] sm:$0xff]  }
   0xf   :  { %775 = vmatprep.subr.bf16.mxu0 %v855_v15  ;;  %758 = vmatpush3.bf16.msra.mxu1 %v856_v16 }
  0x10   :  { %759 = vmatprep.subr.bf16.mxu1 %v858_v18 }
  0x13   :  { %760 = vmatpush3.bf16.msra.mxu1 %v860_v20  ;;  %v883_v20 = vld [vmem:[%s1149_s7 + $0x8] sm:$0xff]  }
  0x14   :  { %761 = vmatprep.subr.bf16.mxu1 %v862_v22 }
  0x15   :  { %819 = vmatmul.mubr.msk.bf16.vlgmr.msra.gmra.mrb[4].mxu0 %vm254_vm3, %v252_v13 }
  0x16   :  { %776 = vmatpush3.bf16.msra.mxu0 %v857_v17  ;;  %v882_v17 = vld [vmem:[%s1149_s7] sm:$0xff]  }
  0x17   :  { %777 = vmatprep.subr.bf16.mxu0 %v859_v19  ;;  %762 = vmatpush3.bf16.msra.mxu1 %v864_v28  ;;  %v888_v28 = vld [vmem:[%s1149_s7 + $0x30] sm:$0xff]  }
  0x18   :  { %763 = vmatprep.subr.bf16.mxu1 %v866_v30 }
  0x1a   :  { %778 = vmatpush3.bf16.msra.mxu0 %v861_v21 }
  0x1b   :  { %779 = vmatprep.subr.bf16.mxu0 %v863_v23  ;;  %764 = vmatpush3.bf16.msra.mxu1 %v868_v35  ;;  %v884_v23 = vld [vmem:[%s1149_s7 + $0x10] sm:$0xff]  }
  0x1c   :  { %765 = vmatprep.subr.bf16.mxu1 %v870_v37 }
  0x1e   :  { %780 = vmatpush3.bf16.msra.mxu0 %v865_v29  ;;  %v889_v29 = vld [vmem:[%s1149_s7 + $0x38] sm:$0xff]  }
  0x1f   :  { %781 = vmatprep.subr.bf16.mxu0 %v867_v32  ;;  %766 = vmatpush3.bf16.msra.mxu1 %v872_v39 }
  0x20   :  { %767 = vmatprep.subr.bf16.mxu1 %v874_v41 }
  0x22   :  { %782 = vmatpush3.bf16.msra.mxu0 %v869_v36 }
  0x23   :  { %783 = vmatprep.subr.bf16.mxu0 %v871_v38  ;;  %768 = vmatpush3.bf16.msra.mxu1 %v876_v51 }
  0x24   :  { %822 = vmatprep.subr.bf16.mxu1 %v890_v0 }
  0x26   :  { %784 = vmatpush3.bf16.msra.mxu0 %v873_v40  ;;  %v737_v40 = vld [vmem:[%s1150_s6] ss:$0 sm:$0xff] }
  0x27   :  { %785 = vmatprep.subr.bf16.mxu0 %v875_v42 }
  0x2a   :  { %786 = vmatpush3.bf16.msra.mxu0 %v877_v52 }
  0x2b   :  { %787 = vmatprep.subr.bf16.mxu0 %v878_v53 }
  0x2e   :  { %788 = vmatpush3.bf16.msra.mxu0 %v879_v54 }
  0x2f   :  { %789 = vmatprep.subr.bf16.mxu0 %v880_v57 }
  0x32   :  { %790 = vmatpush3.bf16.msra.mxu0 %v881_v59 }
  0x82   :  { %v44_v24 = vpop.permute.xlu0 %43 }
  0xe0   :  { %v102_v25 = vpop.f32.mrb[0].mxu0 }
  0xe1   :  { %v103_v26 = vadd.f32 %v102_v25, %v44_v24  ;;  %v814_v27 = vpop.f32.mrb[1].mxu0  ;;  %v885_v25 = vld [vmem:[%s1149_s7 + $0x18] sm:$0xff]  }
  0xe2   :  { %v105_v31 = vpop.f32.mrb[2].mxu0  ;;  %v887_v27 = vld [vmem:[%s1149_s7 + $0x28] sm:$0xff]  }
  0xe3   :  { %v108_v33 = vmax.f32 %v103_v26, 0.0  ;;  %v815_v34 = vpop.f32.mrb[3].mxu0  ;;  %v886_v26 = vld [vmem:[%s1149_s7 + $0x20] sm:$0xff]  }
  0xe5   :  { %109 = vst [vmem:[#allocation2] sm:$0xff] %v108_v33 }
  0xe8   :  { %v1086_v61 = vpop.f32.mrb[4].mxu0 }
  0xe9   :  { %v820_v62 = vpop.f32.mrb[5].mxu0 }
  0xea   :  { %v299_v63 = vpop.f32.mrb[6].mxu0 }
  0xeb   :  { %v821_v1 = vpop.f32.mrb[7].mxu0 }
  0xec   :  { %v156_v43 = vld [vmem:[#allocation2 + $0x2] sm:$0x1]  ;;  %v126_v44 = vld [vmem:[#allocation2 + $0x3] sm:$0x1]  ;;  %v114_v46 = vld [vmem:[#allocation2] sm:$0x1] }
  0xed   :  { %158 = vrot.lane.b32.xlu0 %v156_v43, %s893_s21  ;;  %128 = vrot.lane.b32.xlu1 %v126_v44, %s893_s21  ;;  %v124_v45 = vld [vmem:[#allocation2 + $0x2] sm:$0x1]  ;;  %v148_v47 = vld [vmem:[#allocation2] sm:$0x1]  ;;  %v117_v48 = vld [vmem:[#allocation2 + $0x1] sm:$0x1] }
  0xee   :  { %125 = vst.msk [vmem:[#allocation3 + $0x8] sm:$0x1] %vm115_vm4, %v124_v45  ;;  %116 = vst.msk [vmem:[#allocation3] sm:$0x1] %vm115_vm4, %v114_v46  ;;  %v140_v49 = vld [vmem:[#allocation2 + $0x6] sm:$0x1] }
  0xef   :  { %141 = vst.msk [vmem:[#allocation3 + $0x18] sm:$0x1] %vm115_vm4, %v140_v49  ;;  %v132_v50 = vld [vmem:[#allocation2 + $0x4] sm:$0x1]  ;;  %v172_v55 = vld [vmem:[#allocation2 + $0x6] sm:$0x1] }
  0xf0   :  { %133 = vst.msk [vmem:[#allocation3 + $0x10] sm:$0x1] %vm115_vm4, %v132_v50  ;;  %v142_v56 = vld [vmem:[#allocation2 + $0x7] sm:$0x1]  ;;  %v164_v58 = vld [vmem:[#allocation2 + $0x4] sm:$0x1] }
  0xf1   :  { %150 = vrot.lane.b32.xlu1 %v148_v47, %s893_s21  ;;  %119 = vrot.lane.b32.xlu0 %v117_v48, %s893_s21  ;;  %v134_v60 = vld [vmem:[#allocation2 + $0x5] sm:$0x1]  ;;  %v162_v4 = vld [vmem:[#allocation2 + $0x3] sm:$0x1]  ;;  %v154_v7 = vld [vmem:[#allocation2 + $0x1] sm:$0x1] }
  0xf2   :  { %v178_v10 = vld [vmem:[#allocation2 + $0x7] sm:$0x1]  ;;  %v170_v15 = vld [vmem:[#allocation2 + $0x5] sm:$0x1]  ;;  %v738_v45 = vld [vmem:[%s1151_s8] ss:$0 sm:$0xff] }
  0xf5   :  { %174 = vrot.lane.b32.xlu1 %v172_v55, %s893_s21  ;;  %144 = vrot.lane.b32.xlu0 %v142_v56, %s893_s21 }
  0xf9   :  { %166 = vrot.lane.b32.xlu1 %v164_v58, %s893_s21  ;;  %136 = vrot.lane.b32.xlu0 %v134_v60, %s893_s21 }
 0x15f   :  { %v159_v2 = vpop.permute.xlu0 %158  ;;  %v129_v3 = vpop.permute.xlu1 %128 }
 0x160   :  { %161 = vst.msk [vmem:[#allocation3 + $0x9] sm:$0x1] %vm115_vm4, %v159_v2 }
 0x161   :  { %131 = vst.msk [vmem:[#allocation3 + $0x8] sm:$0x1] %vm122_vm5, %v129_v3  ;;  %163 = vst.msk [vmem:[#allocation3 + $0x9] sm:$0x1] %vm122_vm5, %v162_v4 }
 0x163   :  { %v151_v5 = vpop.permute.xlu1 %150  ;;  %v120_v6 = vpop.permute.xlu0 %119 }
 0x164   :  { %153 = vst.msk [vmem:[#allocation3 + $0x1] sm:$0x1] %vm115_vm4, %v151_v5 }
 0x165   :  { %123 = vst.msk [vmem:[#allocation3] sm:$0x1] %vm122_vm5, %v120_v6  ;;  %155 = vst.msk [vmem:[#allocation3 + $0x1] sm:$0x1] %vm122_vm5, %v154_v7 }
 0x167   :  { %v175_v8 = vpop.permute.xlu1 %174  ;;  %v145_v9 = vpop.permute.xlu0 %144 }
 0x168   :  { %177 = vst.msk [vmem:[#allocation3 + $0x19] sm:$0x1] %vm115_vm4, %v175_v8  ;;  %v181_v11 = vld [vmem:[#allocation3 + $0x8] sm:$0xff] }
 0x169   :  { %147 = vst.msk [vmem:[#allocation3 + $0x18] sm:$0x1] %vm122_vm5, %v145_v9  ;;  %179 = vst.msk [vmem:[#allocation3 + $0x19] sm:$0x1] %vm122_vm5, %v178_v10  ;;  %v185_v12 = vpack.c.bf16 %v181_v11, %v181_v11 }
 0x16b   :  { %v167_v13 = vpop.permute.xlu1 %166  ;;  %526 = vmatprep.mubr.bf16.mxu1 %v185_v12  ;;  %v137_v14 = vpop.permute.xlu0 %136 }
 0x16c   :  { %169 = vst.msk [vmem:[#allocation3 + $0x11] sm:$0x1] %vm115_vm4, %v167_v13  ;;  %v180_v16 = vld [vmem:[#allocation3] sm:$0xff] }
 0x16d   :  { %139 = vst.msk [vmem:[#allocation3 + $0x10] sm:$0x1] %vm122_vm5, %v137_v14  ;;  %171 = vst.msk [vmem:[#allocation3 + $0x11] sm:$0x1] %vm122_vm5, %v170_v15  ;;  %v184_v18 = vpack.c.bf16 %v180_v16, %v180_v16 }
 0x16f   :  { %527 = vmatmul.mubr.bf16.vlgmr.msra.gmra.mrb[0].mxu1 %v184_v18 }
 0x170   :  { %v183_v19 = vld [vmem:[#allocation3 + $0x18] sm:$0xff]  ;;  %823 = vmatpush3.bf16.msra.mxu1 %v882_v17  ;;  %838 = vmatprep.mubr.msk.bf16.mxu1 %vm891_vm0, %v890_v0 }
 0x171   :  { %v187_v21 = vpack.c.bf16 %v183_v19, %v183_v19  ;;  %824 = vmatprep.subr.bf16.mxu1 %v890_v0 }
 0x173   :  { %566 = vmatprep.mubr.bf16.mxu0 %v187_v21 }
 0x174   :  { %v182_v22 = vld [vmem:[#allocation3 + $0x10] sm:$0xff]  ;;  %825 = vmatpush3.bf16.msra.mxu1 %v883_v20 }
 0x175   :  { %v186_v24 = vpack.c.bf16 %v182_v22, %v182_v22  ;;  %826 = vmatprep.subr.bf16.mxu1 %v890_v0 }
 0x177   :  { %567 = vmatmul.mubr.bf16.vlgmr.msra.gmra.mrb[8].mxu0 %v186_v24 }
 0x178   :  { %827 = vmatpush3.bf16.msra.mxu1 %v884_v23 }
 0x179   :  { %828 = vmatprep.subr.bf16.mxu1 %v890_v0 }
 0x17c   :  { %829 = vmatpush3.bf16.msra.mxu1 %v885_v25 }
 0x17d   :  { %830 = vmatprep.subr.bf16.mxu1 %v890_v0 }
 0x180   :  { %831 = vmatpush3.bf16.msra.mxu1 %v886_v26 }
 0x181   :  { %832 = vmatprep.subr.bf16.mxu1 %v890_v0 }
 0x184   :  { %833 = vmatpush3.bf16.msra.mxu1 %v887_v27 }
 0x185   :  { %834 = vmatprep.subr.bf16.mxu1 %v890_v0 }
 0x188   :  { %835 = vmatpush3.bf16.msra.mxu1 %v888_v28 }
 0x189   :  { %836 = vmatprep.subr.bf16.mxu1 %v890_v0 }
 0x18c   :  { %837 = vmatpush3.bf16.msra.mxu1 %v889_v29 }
 0x242   :  { %v769_v30 = vpop.f32.mrb[0].mxu1 }
 0x243   :  { %v770_v31 = vpop.f32.mrb[1].mxu1 }
 0x244   :  { %v771_v32 = vadd.f32 %v770_v31, %v769_v30  ;;  %v772_v33 = vpop.f32.mrb[2].mxu1 }
 0x245   :  { %v773_v34 = vpop.f32.mrb[3].mxu1 }
 0x246   :  { %v529_v35 = vadd.f32 %v771_v32, %v1086_v61 }
 0x24a   :  { %v791_v36 = vpop.f32.mrb[8].mxu0 }
 0x24b   :  { %v792_v37 = vpop.f32.mrb[9].mxu0 }
 0x24c   :  { %v793_v38 = vadd.f32 %v792_v37, %v791_v36  ;;  %v794_v39 = vpop.f32.mrb[10].mxu0 }
 0x24d   :  { %v795_v41 = vpop.f32.mrb[11].mxu0 }
 0x24e   :  { %v569_v42 = vadd.f32 %v793_v38, %v529_v35 }
 0x250   :  { %v581_v43 = vadd.f32 %v737_v40, %v569_v42 }
 0x252   :  { %v582_v0 = vmax.f32 %v581_v43, 0.0 }
 0x254   :  { %v583_v44 = vpack.c.bf16 %v582_v0, %v582_v0 }
 0x256   :  { %839 = vmatmul.mubr.bf16.vlgmr.msra.gmra.mrb[4].mxu1 %v583_v44 }
 0x329   :  { %v689_v46 = vpop.f32.mrb[4].mxu1 }
 0x32a   :  { %v690_v47 = vadd.f32 %v738_v45, %v689_v46  ;;  %v840_v48 = vpop.f32.mrb[5].mxu1 }
 0x32b   :  { %v692_v49 = vpop.f32.mrb[6].mxu1 }
 0x32c   :  { %695 = vst [vmem:[%s1152_s9] sm:$0xff] %v690_v47  ;;  %v841_v50 = vpop.f32.mrb[7].mxu1 }

</bundles_post_ra>
